<compile_context>
chip_gen: v7x
topology: tpu7x:2x2x1
jax: 0.10.0
libtpu: 0.0.40
codegen_flags: <defaults>
</compile_context>

<pallas_src>
import functools

import jax
import jax.numpy as jnp
from jax.experimental import pallas as pl
from jax.experimental.pallas import tpu as pltpu


def _round_up(x, m):
    return ((x + m - 1) // m) * m


def _cdiv(a, b):
    return -(-a // b)


def _label_smoothing_kernel(logits_ref, labels_ref, out_ref,
                            m_sc, s_sc, w_sc, *,
                            w_match, w_other, batch_size, num_classes,
                            c_padded, b_padded):
    i = pl.program_id(0)                     # batch block (parallel)
    j = pl.program_id(1)                     # class chunk (arbitrary, innermost)
    nc = pl.num_programs(1)

    @pl.when(j == 0)
    def _init():
        m_sc[...] = jnp.full(m_sc.shape, -jnp.inf, dtype=m_sc.dtype)
        s_sc[...] = jnp.zeros(s_sc.shape, dtype=s_sc.dtype)
        w_sc[...] = jnp.zeros(w_sc.shape, dtype=w_sc.dtype)

    # Native-dtype DMA; widen to f32 only in VMEM.
    x = logits_ref[...].astype(jnp.float32)                     # (tb, bc)
    tb, bc = x.shape
    labels = labels_ref[...]                                    # (tb, 1) int32

    # (1, bc) global column indices; the compare broadcasts against (tb, 1)
    # labels, so no (tb, bc) int32 iota temp is materialised.
    col = jax.lax.broadcasted_iota(jnp.int32, (1, bc), 1) + j * bc

    # Fused weighted reduction:
    #   sum(x * w) == confidence * x[label] + (smoothing / C) * sum(x)
    weights = jnp.where(col == labels, w_match, w_other)        # (tb, bc) f32
    if c_padded:
        # Padded classes get weight 0 (their logits are a finite finfo.min, so
        # 0 * x_pad == 0 and they drop out of the weighted sum).
        weights = jnp.where(col < num_classes, weights, 0.0)
    xw = x * weights

    # Online (streaming) logsumexp across class chunks.
    m_prev = m_sc[...]                                          # (tb, 1)
    m_new = jnp.maximum(m_prev, jnp.max(x, axis=-1, keepdims=True))
    p = jnp.exp(x - m_new)                                      # padded cols underflow to 0

    # Row reductions on the otherwise-idle MXU (dot with a ones matrix) instead
    # of VALU/XLU reduce trees; take lane 0 of the (tb, 128) result.
    ones_rhs = jnp.ones((bc, 128), jnp.float32)
    s_chunk = jnp.dot(p, ones_rhs, preferred_element_type=jnp.float32)[:, :1]
    w_chunk = jnp.dot(xw, ones_rhs, preferred_element_type=jnp.float32)[:, :1]

    alpha = jnp.exp(m_prev - m_new)                             # 0 on the first chunk
    s_sc[...] = alpha * s_sc[...] + s_chunk
    w_sc[...] = w_sc[...] + w_chunk
    m_sc[...] = m_new

    @pl.when(j == nc - 1)
    def _finalize():
        lse = m_sc[...] + jnp.log(s_sc[...])                    # (tb, 1)
        loss = lse - w_sc[...]
        if b_padded:
            row = jax.lax.broadcasted_iota(jnp.int32, loss.shape, 0) + i * tb
            loss = jnp.where(row < batch_size, loss, 0.0)
        # Lane-dense (8,128) partial-sum tile, disjoint per batch block, so the
        # batch axis can stay "parallel" (dual-TC on v7x).
        out_ref[...] = jnp.full(out_ref.shape, jnp.sum(loss), dtype=out_ref.dtype)


def _vmem_limit_bytes():
    """Generation-aware scoped-VMEM ceiling (~48 MiB v7x, ~96 MiB v5e/v6e)."""
    try:
        cap = pltpu.get_tpu_info().vmem_capacity_bytes
    except Exception:
        cap = 64 << 20                      # conservative (v7x-sized) fallback
    return int(min(cap * 3 // 4, 100 << 20))


def _choose_tiles(B, C, itemsize, vmem_limit):
    """Pick (block_b, block_c).

    VMEM sizing accounts for the double-buffered native-dtype input tile plus
    the ~5 full-size f32 temporaries the body materialises (widened x, weights,
    x*w, x-m, exp), with 2x headroom on top (budget = vmem_limit / 2).
    """
    budget = vmem_limit // 2
    bytes_per_elem = 2 * itemsize + 24      # 2x-buffered input + f32 temporaries

    # Class-axis tile: keep full C when cheap, otherwise a multiple of 128
    # (preferring an exact divisor of C so no class padding is needed).
    if C <= 2048:
        block_c = C
    else:
        max_c = min(2048, max(128, (budget // (256 * bytes_per_elem)) // 128 * 128))
        block_c = 0
        for cand in range(max_c, 127, -128):
            if C % cand == 0:
                block_c = cand
                break
        if block_c == 0:
            block_c = max_c                 # C gets padded + masked in-kernel

    # Batch-axis tile: as big as the budget allows, but capped so the batch
    # grid has ~8 steps (pipelining + v7x dual-TC), floored at 128 rows for DMA
    # efficiency, and never larger than the (8-row padded) batch.
    by_budget = max(8, (budget // (block_c * bytes_per_elem)) // 8 * 8)
    by_split = max(128, _round_up(_cdiv(B, 8), 8))
    block_b = max(8, min(by_budget, by_split, _round_up(B, 8)))
    return block_b, block_c


def label_smoothing_loss(logits, labels, smoothing=0.1, block_b=None, block_c=None):
    """logits: (B, C) float, labels: (B,) int class indices -> scalar loss."""
    B, C = logits.shape
    itemsize = jnp.dtype(logits.dtype).itemsize
    vmem_limit = _vmem_limit_bytes()
    auto_bb, auto_bc = _choose_tiles(B, C, itemsize, vmem_limit)
    bb = auto_bb if block_b is None else block_b
    bc = auto_bc if block_c is None else block_c

    B_pad = _round_up(B, bb)
    C_pad = _round_up(C, bc)
    num_b, num_c = B_pad // bb, C_pad // bc

    x = logits
    if C_pad != C:
        # Pad classes with a very negative *finite* value: exp() underflows to
        # exactly 0 and the kernel zeroes their weight, so they drop out.
        x = jnp.pad(x, ((0, 0), (0, C_pad - C)),
                    constant_values=float(jnp.finfo(logits.dtype).min))
    if B_pad != B:
        x = jnp.pad(x, ((0, B_pad - B), (0, 0)))   # padded rows masked in-kernel

    labels_2d = labels.astype(jnp.int32).reshape(B, 1)
    if B_pad != B:
        labels_2d = jnp.pad(labels_2d, ((0, B_pad - B), (0, 0)))

    # NOTE: like the reference module, out-of-range labels (e.g. ignore_index
    # style padding) are not special-cased.
    confidence = 1.0 - float(smoothing)
    kernel = functools.partial(
        _label_smoothing_kernel,
        w_match=confidence + float(smoothing) / float(C),   # folded at trace time
        w_other=float(smoothing) / float(C),
        batch_size=B, num_classes=C,
        c_padded=(C_pad != C), b_padded=(B_pad != B),
    )

    partials = pl.pallas_call(
        kernel,
        out_shape=jax.ShapeDtypeStruct((num_b, 8, 128), jnp.float32),
        grid_spec=pltpu.PrefetchScalarGridSpec(
            num_scalar_prefetch=0,
            grid=(num_b, num_c),
            in_specs=[
                pl.BlockSpec((bb, bc), lambda i, j: (i, j)),   # native-dtype logits
                pl.BlockSpec((bb, 1), lambda i, j: (i, 0)),    # int32 labels
            ],
            out_specs=pl.BlockSpec((1, 8, 128), lambda i, j: (i, 0, 0)),
            scratch_shapes=[
                pltpu.VMEM((bb, 1), jnp.float32),   # running max
                pltpu.VMEM((bb, 1), jnp.float32),   # running sum(exp)
                pltpu.VMEM((bb, 1), jnp.float32),   # running weighted sum
            ],
        ),
        compiler_params=pltpu.CompilerParams(
            dimension_semantics=("parallel", "arbitrary"),
            vmem_limit_bytes=vmem_limit,
        ),
    )(x, labels_2d)

    # Tiny final reduction + mean in f32 outside the kernel.
    return jnp.sum(partials[:, 0, 0]) / jnp.float32(B)


def _reference(logits, labels, smoothing=0.1):
    confidence = 1.0 - smoothing
    logits = logits.astype(jnp.float32)
    logprobs = jax.nn.log_softmax(logits, axis=-1)
    nll = -jnp.take_along_axis(logprobs, labels.astype(jnp.int32)[:, None],
                               axis=-1)[:, 0]
    smooth = -jnp.mean(logprobs, axis=-1)
    return jnp.mean(confidence * nll + smoothing * smooth)


if __name__ == "__main__":
    key = jax.random.PRNGKey(0)
    k1, k2, k3, k4 = jax.random.split(key, 4)

    # Tolerances are modest because the MXU-offloaded row reductions may use
    # bf16-pass matmul precision depending on generation / default precision.

    # --- small f32 case ---
    B, C = 8, 32
    logits_f32 = jax.random.normal(k1, (B, C), dtype=jnp.float32)
    labels = jax.random.randint(k2, (B,), 0, C, dtype=jnp.int32)
    loss = jax.block_until_ready(label_smoothing_loss(logits_f32, labels, 0.1))
    ref = _reference(logits_f32, labels, 0.1)
    assert jnp.allclose(loss, ref, atol=5e-3, rtol=5e-3), (loss, ref)

    # --- bf16 inputs stay bf16 over HBM, widened in-kernel ---
    logits_bf16 = logits_f32.astype(jnp.bfloat16)
    loss_bf16 = jax.block_until_ready(label_smoothing_loss(logits_bf16, labels, 0.1))
    ref_bf16 = _reference(logits_bf16, labels, 0.1)
    assert jnp.allclose(loss_bf16, ref_bf16, atol=2e-2, rtol=2e-2), (loss_bf16, ref_bf16)

    # --- exercises class-axis tiling (+ class padding/mask) and batch padding ---
    B2, C2 = 22, 160
    logits2 = jax.random.normal(k3, (B2, C2), dtype=jnp.float32)
    labels2 = jax.random.randint(k4, (B2,), 0, C2, dtype=jnp.int32)
    loss2 = jax.block_until_ready(
        label_smoothing_loss(logits2, labels2, 0.1, block_b=8, block_c=128))
    ref2 = _reference(logits2, labels2, 0.1)
    assert jnp.allclose(loss2, ref2, atol=5e-3, rtol=5e-3), (loss2, ref2)

    print("KERNEL_OK")
</pallas_src>

<mosaic_0001>
module attributes {stable_mosaic.version = 11 : i64} {
  func.func @_label_smoothing_kernel(%arg0: i32, %arg1: i32, %arg2: memref<8x32xf32, #tpu.memory_space<vmem>>, %arg3: memref<8x1xi32, #tpu.memory_space<vmem>>, %arg4: memref<1x8x128xf32, #tpu.memory_space<vmem>>, %arg5: memref<8x1xf32, #tpu.memory_space<vmem>>, %arg6: memref<8x1xf32, #tpu.memory_space<vmem>>, %arg7: memref<8x1xf32, #tpu.memory_space<vmem>>) attributes {dimension_semantics = [#tpu.dimension_semantics<parallel>, #tpu.dimension_semantics<arbitrary>], iteration_bounds = array<i64: 1, 1>, scalar_prefetch = 0 : i64, scratch_operands = 3 : i64, tpu.core_type = #tpu.core_type<tc>, window_params = [{transform_indices = @transform_0, window_bounds = array<i64: 8, 32>}, {transform_indices = @transform_1, window_bounds = array<i64: 8, 1>}, {transform_indices = @transform_2, window_bounds = array<i64: 1, 8, 128>}]} {
    %c0_i32 = arith.constant 0 : i32
    %0 = arith.cmpi eq, %arg1, %c0_i32 : i32
    %1 = arith.extui %0 : i1 to i32
    %c0_i32_0 = arith.constant 0 : i32
    %2 = arith.cmpi ne, %1, %c0_i32_0 : i32
    scf.if %2 {
      %cst_23 = arith.constant 0xFF800000 : f32
      %41 = vector.broadcast %cst_23 : f32 to vector<8x1xf32>
      %c0_24 = arith.constant 0 : index
      %c0_25 = arith.constant 0 : index
      %42 = vector.load %arg5[%c0_24, %c0_25] : memref<8x1xf32, #tpu.memory_space<vmem>>, vector<8x1xf32>
      tpu.vector_store %arg5[%c0_24, %c0_25], %41 {strides = array<i32>} : memref<8x1xf32, #tpu.memory_space<vmem>>, vector<8x1xf32>,
      %cst_26 = arith.constant 0.000000e+00 : f32
      %43 = vector.broadcast %cst_26 : f32 to vector<8x1xf32>
      %c0_27 = arith.constant 0 : index
      %c0_28 = arith.constant 0 : index
      %44 = vector.load %arg6[%c0_27, %c0_28] : memref<8x1xf32, #tpu.memory_space<vmem>>, vector<8x1xf32>
      tpu.vector_store %arg6[%c0_27, %c0_28], %43 {strides = array<i32>} : memref<8x1xf32, #tpu.memory_space<vmem>>, vector<8x1xf32>,
      %cst_29 = arith.constant 0.000000e+00 : f32
      %45 = vector.broadcast %cst_29 : f32 to vector<8x1xf32>
      %c0_30 = arith.constant 0 : index
      %c0_31 = arith.constant 0 : index
      %46 = vector.load %arg7[%c0_30, %c0_31] : memref<8x1xf32, #tpu.memory_space<vmem>>, vector<8x1xf32>
      tpu.vector_store %arg7[%c0_30, %c0_31], %45 {strides = array<i32>} : memref<8x1xf32, #tpu.memory_space<vmem>>, vector<8x1xf32>,
    } else {
    }
    %c0 = arith.constant 0 : index
    %c0_1 = arith.constant 0 : index
    %3 = vector.load %arg2[%c0, %c0_1] : memref<8x32xf32, #tpu.memory_space<vmem>>, vector<8x32xf32>
    %c0_2 = arith.constant 0 : index
    %c0_3 = arith.constant 0 : index
    %4 = vector.load %arg3[%c0_2, %c0_3] : memref<8x1xi32, #tpu.memory_space<vmem>>, vector<8x1xi32>
    %5 = tpu.iota {dimensions = array<i32: 1>} : vector<1x32xi32>
    %c32_i32 = arith.constant 32 : i32
    %6 = arith.muli %arg1, %c32_i32 : i32
    %7 = vector.broadcast %6 : i32 to vector<1x32xi32>
    %8 = arith.addi %5, %7 : vector<1x32xi32>
    %9 = vector.broadcast %8 : vector<1x32xi32> to vector<8x32xi32>
    %10 = vector.broadcast %4 : vector<8x1xi32> to vector<8x32xi32>
    %11 = arith.cmpi eq, %9, %10 : vector<8x32xi32>
    %cst = arith.constant 0.903124988 : f32
    %cst_4 = arith.constant 3.125000e-03 : f32
    %12 = vector.broadcast %cst : f32 to vector<8x32xf32>
    %13 = vector.broadcast %cst_4 : f32 to vector<8x32xf32>
    %14 = arith.select %11, %12, %13 : vector<8x32xi1>, vector<8x32xf32>
    %15 = arith.mulf %3, %14 : vector<8x32xf32>
    %c0_5 = arith.constant 0 : index
    %c0_6 = arith.constant 0 : index
    %16 = vector.load %arg5[%c0_5, %c0_6] : memref<8x1xf32, #tpu.memory_space<vmem>>, vector<8x1xf32>
    %cst_7 = arith.constant dense<0xFF800000> : vector<8xf32>
    %17 = vector.multi_reduction <maximumf>, %3, %cst_7 [1] : vector<8x32xf32> to vector<8xf32>
    %18 = vector.shape_cast %17 : vector<8xf32> to vector<8x1xf32>
    %19 = arith.maximumf %16, %18 : vector<8x1xf32>
    %20 = vector.broadcast %19 : vector<8x1xf32> to vector<8x32xf32>
    %21 = arith.subf %3, %20 : vector<8x32xf32>
    %22 = math.exp %21 : vector<8x32xf32>
    %cst_8 = arith.constant 1.000000e+00 : f32
    %23 = vector.broadcast %cst_8 : f32 to vector<32x128xf32>
    %cst_9 = arith.constant dense<0.000000e+00> : vector<8x128xf32>
    %24 = tpu.matmul %22, %23, %cst_9 {dimension_numbers = #tpu.dot_dimension_numbers<[1], [0], [0], [1], [0, 0, 1, 1], [], []>} : vector<8x32xf32>, vector<32x128xf32>, vector<8x128xf32> -> vector<8x128xf32>
    %25 = vector.extract_strided_slice %24 {offsets = [0, 0], sizes = [8, 1], strides = [1, 1]} : vector<8x128xf32> to vector<8x1xf32>
    %cst_10 = arith.constant dense<0.000000e+00> : vector<8x128xf32>
    %26 = tpu.matmul %15, %23, %cst_10 {dimension_numbers = #tpu.dot_dimension_numbers<[1], [0], [0], [1], [0, 0, 1, 1], [], []>} : vector<8x32xf32>, vector<32x128xf32>, vector<8x128xf32> -> vector<8x128xf32>
    %27 = vector.extract_strided_slice %26 {offsets = [0, 0], sizes = [8, 1], strides = [1, 1]} : vector<8x128xf32> to vector<8x1xf32>
    %28 = arith.subf %16, %19 : vector<8x1xf32>
    %29 = math.exp %28 : vector<8x1xf32>
    %c0_11 = arith.constant 0 : index
    %c0_12 = arith.constant 0 : index
    %30 = vector.load %arg6[%c0_11, %c0_12] : memref<8x1xf32, #tpu.memory_space<vmem>>, vector<8x1xf32>
    %31 = arith.mulf %29, %30 : vector<8x1xf32>
    %32 = arith.addf %31, %25 : vector<8x1xf32>
    %c0_13 = arith.constant 0 : index
    %c0_14 = arith.constant 0 : index
    %33 = vector.load %arg6[%c0_13, %c0_14] : memref<8x1xf32, #tpu.memory_space<vmem>>, vector<8x1xf32>
    tpu.vector_store %arg6[%c0_13, %c0_14], %32 {strides = array<i32>} : memref<8x1xf32, #tpu.memory_space<vmem>>, vector<8x1xf32>,
    %c0_15 = arith.constant 0 : index
    %c0_16 = arith.constant 0 : index
    %34 = vector.load %arg7[%c0_15, %c0_16] : memref<8x1xf32, #tpu.memory_space<vmem>>, vector<8x1xf32>
    %35 = arith.addf %34, %27 : vector<8x1xf32>
    %c0_17 = arith.constant 0 : index
    %c0_18 = arith.constant 0 : index
    %36 = vector.load %arg7[%c0_17, %c0_18] : memref<8x1xf32, #tpu.memory_space<vmem>>, vector<8x1xf32>
    tpu.vector_store %arg7[%c0_17, %c0_18], %35 {strides = array<i32>} : memref<8x1xf32, #tpu.memory_space<vmem>>, vector<8x1xf32>,
    %c0_19 = arith.constant 0 : index
    %c0_20 = arith.constant 0 : index
    %37 = vector.load %arg5[%c0_19, %c0_20] : memref<8x1xf32, #tpu.memory_space<vmem>>, vector<8x1xf32>
    tpu.vector_store %arg5[%c0_19, %c0_20], %19 {strides = array<i32>} : memref<8x1xf32, #tpu.memory_space<vmem>>, vector<8x1xf32>,
    %c0_i32_21 = arith.constant 0 : i32
    %38 = arith.cmpi eq, %arg1, %c0_i32_21 : i32
    %39 = arith.extui %38 : i1 to i32
    %c0_i32_22 = arith.constant 0 : i32
    %40 = arith.cmpi ne, %39, %c0_i32_22 : i32
    scf.if %40 {
      %c0_23 = arith.constant 0 : index
      %c0_24 = arith.constant 0 : index
      %41 = vector.load %arg5[%c0_23, %c0_24] : memref<8x1xf32, #tpu.memory_space<vmem>>, vector<8x1xf32>
      %c0_25 = arith.constant 0 : index
      %c0_26 = arith.constant 0 : index
      %42 = vector.load %arg6[%c0_25, %c0_26] : memref<8x1xf32, #tpu.memory_space<vmem>>, vector<8x1xf32>
      %43 = math.log %42 : vector<8x1xf32>
      %44 = arith.addf %41, %43 : vector<8x1xf32>
      %c0_27 = arith.constant 0 : index
      %c0_28 = arith.constant 0 : index
      %45 = vector.load %arg7[%c0_27, %c0_28] : memref<8x1xf32, #tpu.memory_space<vmem>>, vector<8x1xf32>
      %46 = arith.subf %44, %45 : vector<8x1xf32>
      %47 = vector.shape_cast %46 : vector<8x1xf32> to vector<1x8x1xf32>
      %cst_29 = arith.constant dense<0.000000e+00> : vector<1xf32>
      %48 = vector.multi_reduction <add>, %47, %cst_29 [1, 2] : vector<1x8x1xf32> to vector<1xf32>
      %49 = vector.shape_cast %48 : vector<1xf32> to vector<1x1x1xf32>
      %50 = vector.extract %49[0, 0, 0] : f32 from vector<1x1x1xf32>
      %51 = vector.broadcast %50 : f32 to vector<1x8x128xf32>
      %c0_30 = arith.constant 0 : index
      %c0_31 = arith.constant 0 : index
      %c0_32 = arith.constant 0 : index
      %52 = vector.load %arg4[%c0_30, %c0_31, %c0_32] : memref<1x8x128xf32, #tpu.memory_space<vmem>>, vector<1x8x128xf32>
      tpu.vector_store %arg4[%c0_30, %c0_31, %c0_32], %51 {strides = array<i32>} : memref<1x8x128xf32, #tpu.memory_space<vmem>>, vector<1x8x128xf32>,
    } else {
    }
    return
  }
  func.func @transform_0(%arg0: i32, %arg1: i32) -> (i32, i32) {
    %c0_i32 = arith.constant 0 : i32
    return %arg0, %arg1 : i32, i32
  }
  func.func @transform_1(%arg0: i32, %arg1: i32) -> (i32, i32) {
    %c0_i32 = arith.constant 0 : i32
    %c0_i32_0 = arith.constant 0 : i32
    return %arg0, %c0_i32 : i32, i32
  }
  func.func @transform_2(%arg0: i32, %arg1: i32) -> (i32, i32, i32) {
    %c0_i32 = arith.constant 0 : i32
    %c0_i32_0 = arith.constant 0 : i32
    %c0_i32_1 = arith.constant 0 : i32
    return %arg0, %c0_i32, %c0_i32_0 : i32, i32, i32
  }
}

</mosaic_0001>

<bundles_post_ra>
// kernel: tpu_custom_call.1
= control target key start
LH: loop header
LB: loop body
LE: loop exit
PB: predicated region body
PF: predicated region fallthrough
CT: control target
= control target key end

     0   :  { %vm34_vm0 = vcmask 261120   ;;  %s376_s0 = inlined_call_operand.vmem [shape: f32[8,32], index: 0, kind: input, shape index: {}]   ;;  %s377_s1 = inlined_call_operand.vmem [shape: s32[8,1], index: 1, kind: input, shape index: {}]   ;;  %s378_s2 = inlined_call_operand.hbm [shape: f32[1,8,128], index: 2, kind: output, shape index: {}]  }
   0x1   :  { %v20_v0 = vld [vmem:[%s376_s0] sm:$0xff] }
   0x2   :  { %7 = vsyncpa [#allocation6], 0  ;;  %v35_v1 = vsel %vm34_vm0, %v20_v0, -inf  ;;  %vm16_vm1 = vcmask 7168   ;;  %v325_v2 = vmov -inf   ;;  %v326_v3 = vmov 0  }
   0x3   :  { %36 = vmax.xlane.f32.xlu0 %v35_v1  ;;  %17 = vst.msk [vmem:[#allocation2] sm:$0xff] %vm16_vm1, %v325_v2  ;;  %294 = vset.pattern.permute.xlu1 %v326_v3  ;;  %v21_v4 = vld [vmem:[%s377_s1] sm:$0xff]  ;;  %v327_v5 = vmov 0.0   ;;  %v328_v10 = vmov 0.0|0.0   ;;  %vm329_vm2 = vmmov 0   ;;  %v22_v12 = vlaneseq  ;;  %s332_s0 = smov [#allocation5]  }
   0x4   :  { %293 = vset.pattern.permute.xlu0 %v326_v3  ;;  %28 = vperm.xlu1 %294, %v21_v4   ;;  %18 = vst.msk [vmem:[#allocation3] sm:$0xff] %vm16_vm1, %v327_v5  ;;  %19 = vst.msk [vmem:[#allocation4] sm:$0xff] %vm16_vm1, %v327_v5  ;;  %v330_v11 = vmov 1.0|1.0   ;;  %v331_v15 = vmov 0.003125  }
   0x5   :  { %275 = vmatprep.subr.bf16.mxu0 %v328_v10  ;;  %261 = vmatprep.mubr.msk.f32.mxu0 %vm329_vm2, %v327_v5  ;;  %v23_v14 = vand.u32 127, %v22_v12  ;;  %s233_s1 = sshll.u32 %s332_s0, 4  ;;  %s234_s1 = int_to_ptr.vmem [resolvable:$true] %s233_s1 }
   0x6   :  { %276 = vmatpush3.bf16.msra.mxu0 %v330_v11  ;;  %279 = vmatprep.subr.bf16.mxu1 %v328_v10  ;;  %s301_s14 = scalar_lea.vmem %s234_s1, 128  ;;  %p306_p1 = scmp.lt.s32.totalorder %s234_s1, %s234_s1 }
   0x7   :  { %277 = vmatprep.subr.bf16.mxu0 %v328_v10  ;;  %280 = vmatpush3.bf16.msra.mxu1 %v330_v11  ;;  %p302_p0 = scmp.ne.s32.totalorder %s234_s1, %s301_s14  ;;  %p307_p2 = scmp.lt.s32.totalorder %s301_s14, %s301_s14 }
   0x8   :  { %281 = vmatprep.subr.bf16.mxu1 %v328_v10  ;;  %272 = vmatprep.mubr.msk.f32.mxu1 %vm329_vm2, %v327_v5 }
   0x9   :  { %p308_p3 = por %p307_p2, %p306_p1 }
   0xa   :  { %v33_v6 = vld [vmem:[#allocation2] sm:$0xff]  ;;  %278 = vmatpush3.bf16.msra.mxu0 %v330_v11 }
   0xb   :  { %282 = vmatpush3.bf16.msra.mxu1 %v330_v11  ;;  %v201_v22 = vld [vmem:[#allocation4] sm:$0xff]  ;;  %v196_v28 = vld [vmem:[#allocation3] sm:$0xff]  ;;  %p309_p4 = pnand %p308_p3, %p302_p0 }
  0x83   :  { %v29_v13 = vpop.permute.xlu1 %28 }
  0x84   :  { %vm30_vm3 = vcmp.eq.s32.totalorder %v23_v14, %v29_v13 }
  0x85   :  { %v31_v16 = vsel %vm30_vm3, 0.903125, %v331_v15 }
  0x86   :  { %v32_v17 = vmul.f32 %v31_v16, %v20_v0 }
  0x88   :  { %273 = vmatmul.mubr.msk.f32.vlgmr.msra.gmra.mrb[0].mxu1 %vm34_vm0, %v32_v17 }
  0x90   :  { %v37_v7 = vpop.xlane.xlu0 %36 }
  0x91   :  { %v38_v8 = vmax.f32 %v33_v6, %v37_v7 }
  0x93   :  { %v193_v9 = vsub.f32 %v33_v6, %v38_v8  ;;  %204 = vst.msk [vmem:[#allocation2] sm:$0xff] %vm16_vm1, %v38_v8  ;;  %41 = vperm.xlu0 %293, %v38_v8  }
  0x95   :  { %v194_v26 = vmul.f32 1.442695, %v193_v9 }
  0x9a   :  { %v208_v36 = vld [vmem:[#allocation2] sm:$0xff] }
 0x112   :  { %v42_v18 = vpop.permute.xlu0 %41 }
 0x113   :  { %v44_v19 = vsub.f32 %v20_v0, %v42_v18 }
 0x115   :  { %v45_v20 = vmul.f32 1.442695, %v44_v19 }
 0x117   :  { %295 = vpow2.f32 %v45_v20 }
 0x118   :  { %297 = vpow2.f32 %v194_v26 }
 0x121   :  { %v296_v21 = vpop.eup %295 }
 0x122   :  { %262 = vmatmul.mubr.msk.f32.vlgmr.msra.gmra.mrb[0].mxu0 %vm34_vm0, %v296_v21  ;;  %v298_v27 = vpop.eup %297 }
 0x123   :  { %v197_v29 = vmul.f32 %v298_v27, %v196_v28 }
 0x15b   :  { %v189_v23 = vpop.f32.mrb[0].mxu1 }
 0x15c   :  { %v202_v24 = vadd.f32 %v201_v22, %v189_v23  ;;  %v274_v25 = vpop.f32.mrb[1].mxu1 }
 0x15e   :  { %203 = vst.msk [vmem:[#allocation4] sm:$0xff] %vm16_vm1, %v202_v24 }
 0x165   :  { %v213_v37 = vld [vmem:[#allocation4] sm:$0xff] }
 0x1f5   :  { %v116_v30 = vpop.f32.mrb[0].mxu0 }
 0x1f6   :  { %v198_v31 = vadd.f32 %v197_v29, %v116_v30  ;;  %v263_v32 = vpop.f32.mrb[1].mxu0 }
 0x1f8   :  { %200 = vst.msk [vmem:[#allocation3] sm:$0xff] %vm16_vm1, %v198_v31 }
 0x1ff   :  { %v209_v33 = vld [vmem:[#allocation3] sm:$0xff] }
 0x200   :  { %299 = vlog2.f32 %v209_v33 }
 0x20a   :  { %v300_v34 = vpop.eup %299 }
 0x20b   :  { %v211_v35 = vmul.f32 0.6931472, %v300_v34 }
 0x20d   :  { %v212_v38 = vadd.f32 %v211_v35, %v208_v36 }
 0x20f   :  { %v214_v39 = vsub.f32 %v212_v38, %v213_v37 }
 0x211   :  { %v215_v40 = vsel %vm16_vm1, %v214_v39, 0.0 }
 0x212   :  { %216 = vadd.xlane.f32.xlu1 %v215_v40 }
 0x29f   :  { %v217_v41 = vpop.xlane.xlu1 %216 }
 0x2a0   :  { %v218_v42 = vrot.slane %v217_v41, 4 }
 0x2a2   :  { %v219_v43 = vadd.f32 %v218_v42, %v217_v41 }
 0x2a4   :  { %v220_v44 = vrot.slane %v219_v43, 2 }
 0x2a6   :  { %v221_v45 = vadd.f32 %v220_v44, %v219_v43 }
 0x2a8   :  { %v222_v46 = vrot.slane %v221_v45, 1 }
 0x2aa   :  { %v223_v47 = vadd.f32 %v222_v46, %v221_v45 }
 0x2ac   :  { %283 = vpush %v223_v47 }
 0x2dd   :  { %s284_s13 = spop %283 }
 0x2de   :  { %v225_v48 = vstv %s284_s13 }
 0x2df   :  { %226 = vst [vmem:[#allocation5] sm:$0xff] %v225_v48 }
 0x2e0   :  { %312 = shalt.err (!%p309_p4)
}
 0x2e1   :  { %s313_s17 = scalar_lea.hbm %s378_s2, 128 }
 0x2e2   :  { %p314_p5 = scmp.ne.s32.totalorder %s378_s2, %s313_s17  ;;  %p317_p6 = scmp.lt.u32.totalorder %s313_s17, %s378_s2 }
 0x2e4   :  { %p319_p7 = pnand %p317_p6, %p314_p5 }
 0x2e6   :  { %322 = shalt.err (!%p319_p7)
}
 0x2e7   :  { %236 = dma.vmem_to_hbm [thread:$0]  %s234_s1, 128, %s378_s2, [#allocation6]  }
 0x2e8   :  { %323 = dma.done.wait [#allocation6], 128  }
 0x2e9   :  { %324 = vsyncadd [#allocation6], 4294967168 }
 0x2ea   :  { %240 = vsyncpa [#allocation6], 1 }

</bundles_post_ra>
